<compile_context>
chip_gen: v7x
topology: tpu7x:2x2x1
jax: 0.10.0
libtpu: 0.0.40
codegen_flags: <defaults>
</compile_context>

<pallas_src>
import numpy as np
import jax
import jax.numpy as jnp
from jax import lax
from jax.experimental import pallas as pl
from jax.experimental.pallas import tpu as pltpu

LANES = 128
SUBLANES = 8
MAX_BLOCK_ROWS = 8192        # (8192,128) f32 = 4 MiB per input per pipeline buffer
CHUNK_ROWS = 512             # inner-loop sub-chunk; bounds live ranges (~256 KiB temps)
VMEM_LIMIT_BYTES = 32 * 1024 * 1024


def _round_up(x, m):
    return ((x + m - 1) // m) * m


def _make_dice_partials_kernel(rows, block_rows, chunk_rows, bpc, nblocks, ragged):
    """Produces per-core (8,128) intersection / union partial sums."""
    n_chunks = block_rows // chunk_rows

    def kernel(p_ref, t_ref, inter_ref, union_ref):
        c = pl.program_id(0)                 # core / partial-output index ("parallel")
        i = pl.program_id(1)                 # row-block index within the core ("arbitrary")
        g = c * bpc + i                      # global row-block index (may exceed nblocks-1)

        @pl.when(i == 0)
        def _init():
            inter_ref[...] = jnp.zeros_like(inter_ref)
            union_ref[...] = jnp.zeros_like(union_ref)

        def accumulate(masked):
            def chunk_body(j, carry):
                inter_c, union_c = carry
                r0 = pl.multiple_of(j * chunk_rows, SUBLANES)
                x = p_ref[pl.ds(r0, chunk_rows), :].astype(jnp.float32)
                t = t_ref[pl.ds(r0, chunk_rows), :].astype(jnp.float32)
                # sigmoid(x) == 0.5*(tanh(x/2)+1): transcendental goes to the
                # otherwise-idle EUP slot instead of a VALU-heavy divide.
                pre = 0.5 * (jnp.tanh(0.5 * x) + 1.0)
                inter = pre * t
                union = pre + t
                if masked:
                    # Ragged last block / fully-out-of-range virtual blocks only.
                    # Must stay a jnp.where (NOT multiply-by-mask): Pallas-padded
                    # rows are unspecified and may contain NaN/Inf.
                    row = lax.broadcasted_iota(jnp.int32, (chunk_rows, LANES), 0)
                    valid = (g * block_rows + r0 + row) < rows
                    inter = jnp.where(valid, inter, 0.0)
                    union = jnp.where(valid, union, 0.0)
                # Fold (chunk_rows,128) -> (8,128): lockstep VPU adds, no XLU.
                inter_c = inter_c + inter.reshape(
                    chunk_rows // SUBLANES, SUBLANES, LANES).sum(axis=0)
                union_c = union_c + union.reshape(
                    chunk_rows // SUBLANES, SUBLANES, LANES).sum(axis=0)
                return inter_c, union_c

            zero = jnp.zeros((SUBLANES, LANES), jnp.float32)
            inter_c, union_c = lax.fori_loop(
                0, n_chunks, chunk_body, (zero, zero), unroll=True)
            # Accumulate straight into the per-core output block (f32), which
            # stays VMEM-resident across the "arbitrary" axis.
            inter_ref[0] = inter_ref[0] + inter_c
            union_ref[0] = union_ref[0] + union_c

        if not ragged:
            # Every block is completely valid: unmasked fast path everywhere.
            accumulate(False)
        else:
            if nblocks > 1:
                @pl.when(g < nblocks - 1)
                def _full():
                    accumulate(False)

            @pl.when(g >= nblocks - 1)
            def _tail():
                accumulate(True)

    return kernel


def dice_loss(predict, target, epsilon=1e-5):
    assert predict.shape == target.shape, (
        "the size of predict and target must be equal.")
    total = int(np.prod(predict.shape))

    # Stream in the caller's dtype (kernel upcasts after the load): passing
    # bf16 predict/target halves HBM traffic on the mem-bound v5e/v6e path.
    p = predict.reshape(-1)
    t = target.reshape(-1)

    rows = total // LANES
    tail = total - rows * LANES

    tail_inter = jnp.float32(0.0)
    tail_union = jnp.float32(0.0)
    if tail:
        # <128-element ragged tail handled by a tiny XLA op (no full-array pad).
        pt = jax.nn.sigmoid(p[rows * LANES:].astype(jnp.float32))
        tt = t[rows * LANES:].astype(jnp.float32)
        tail_inter = (pt * tt).sum()
        tail_union = (pt + tt).sum()
        # TODO(synk): this bulk slice is one extra HBM copy; only taken when the
        # element count is not a multiple of 128 (rare for segmentation shapes).
        p = p[: rows * LANES]
        t = t[: rows * LANES]

    if rows == 0:
        return 1.0 - 2.0 * (tail_inter + epsilon) / (tail_union + epsilon)

    p2 = p.reshape(rows, LANES)   # zero-copy: contiguous row-major reshape
    t2 = t.reshape(rows, LANES)

    # Tile selection: largest lane-dense block that fits comfortably in VMEM.
    if rows >= CHUNK_ROWS:
        block_rows = min(MAX_BLOCK_ROWS, _round_up(rows, CHUNK_ROWS))
        chunk_rows = CHUNK_ROWS
    else:
        block_rows = _round_up(rows, SUBLANES)
        chunk_rows = block_rows
    nblocks = pl.cdiv(rows, block_rows)

    # Leading "parallel" axis: on v7x each TensorCore owns half of the
    # row-blocks and writes its own (8,128) partials; 1-TC chips run both
    # sequentially at no extra cost.
    ncores = 2 if nblocks >= 2 else 1
    bpc = pl.cdiv(nblocks, ncores)                       # row-blocks per core
    ragged = (rows % block_rows != 0) or (ncores * bpc != nblocks)

    kernel = _make_dice_partials_kernel(
        rows, block_rows, chunk_rows, bpc, nblocks, ragged)

    # Clamp the row-block index so virtual overflow blocks (when nblocks does
    # not split evenly across cores) DMA in-bounds data; their logical rows are
    # fully masked in-kernel, so their contribution is zero.
    in_map = lambda c, i: (jnp.minimum(c * bpc + i, nblocks - 1), 0)
    out_map = lambda c, i: (c, 0, 0)

    inter_part, union_part = pl.pallas_call(
        kernel,
        out_shape=(
            jax.ShapeDtypeStruct((ncores, SUBLANES, LANES), jnp.float32),
            jax.ShapeDtypeStruct((ncores, SUBLANES, LANES), jnp.float32),
        ),
        grid_spec=pltpu.PrefetchScalarGridSpec(
            num_scalar_prefetch=0,
            grid=(ncores, bpc),
            in_specs=[
                pl.BlockSpec((block_rows, LANES), in_map),
                pl.BlockSpec((block_rows, LANES), in_map),
            ],
            out_specs=(
                pl.BlockSpec((1, SUBLANES, LANES), out_map),
                pl.BlockSpec((1, SUBLANES, LANES), out_map),
            ),
        ),
        compiler_params=pltpu.CompilerParams(
            dimension_semantics=("parallel", "arbitrary"),
            vmem_limit_bytes=VMEM_LIMIT_BYTES,
        ),
    )(p2, t2)

    # Tiny cross-core combine + dice formula in the wrapper.
    intersection = inter_part.sum() + tail_inter
    union = union_part.sum() + tail_union
    return 1.0 - 2.0 * (intersection + epsilon) / (union + epsilon)


def dice_loss_ref(predict, target, epsilon=1e-5):
    num = predict.shape[0]
    pre = jax.nn.sigmoid(predict.astype(jnp.float32)).reshape(num, -1)
    tar = target.astype(jnp.float32).reshape(num, -1)
    intersection = (pre * tar).sum(-1).sum()
    union = (pre + tar).sum(-1).sum()
    return 1.0 - 2.0 * (intersection + epsilon) / (union + epsilon)


if __name__ == "__main__":
    key = jax.random.PRNGKey(0)
    k1, k2 = jax.random.split(key)
    # NCHW segmentation logits + binary target.  Target streamed as bf16
    # (exact for 0/1) to halve its HBM traffic; the kernel upcasts after load.
    predict = jax.random.normal(k1, (2, 4, 16, 16), dtype=jnp.float32)
    target = (jax.random.uniform(k2, (2, 4, 16, 16)) > 0.5).astype(jnp.bfloat16)

    score = jax.block_until_ready(dice_loss(predict, target))
    ref = jax.block_until_ready(dice_loss_ref(predict, target))
    assert np.allclose(np.asarray(score), np.asarray(ref), rtol=1e-5, atol=1e-5), (
        score, ref)
    print("KERNEL_OK")
</pallas_src>

<mosaic_0001>
module attributes {stable_mosaic.version = 11 : i64} {
  func.func @kernel(%arg0: i32, %arg1: i32, %arg2: memref<16x128xf32, #tpu.memory_space<vmem>>, %arg3: memref<16x128xbf16, #tpu.memory_space<vmem>>, %arg4: memref<1x8x128xf32, #tpu.memory_space<vmem>>, %arg5: memref<1x8x128xf32, #tpu.memory_space<vmem>>) attributes {dimension_semantics = [#tpu.dimension_semantics<parallel>, #tpu.dimension_semantics<arbitrary>], iteration_bounds = array<i64: 1, 1>, scalar_prefetch = 0 : i64, scratch_operands = 0 : i64, tpu.core_type = #tpu.core_type<tc>, window_params = [{transform_indices = @transform_0, window_bounds = array<i64: 16, 128>}, {transform_indices = @transform_1, window_bounds = array<i64: 16, 128>}, {transform_indices = @transform_2, window_bounds = array<i64: 1, 8, 128>}, {transform_indices = @transform_3, window_bounds = array<i64: 1, 8, 128>}]} {
    %c0_i32 = arith.constant 0 : i32
    %0 = arith.cmpi eq, %arg1, %c0_i32 : i32
    %1 = arith.extui %0 : i1 to i32
    %c0_i32_0 = arith.constant 0 : i32
    %2 = arith.cmpi ne, %1, %c0_i32_0 : i32
    scf.if %2 {
      %cst_20 = arith.constant 0.000000e+00 : f32
      %38 = vector.broadcast %cst_20 : f32 to vector<1x8x128xf32>
      %c0_21 = arith.constant 0 : index
      %c0_22 = arith.constant 0 : index
      %c0_23 = arith.constant 0 : index
      %39 = vector.load %arg4[%c0_21, %c0_22, %c0_23] : memref<1x8x128xf32, #tpu.memory_space<vmem>>, vector<1x8x128xf32>
      tpu.vector_store %arg4[%c0_21, %c0_22, %c0_23], %38 {strides = array<i32>} : memref<1x8x128xf32, #tpu.memory_space<vmem>>, vector<1x8x128xf32>,
      %cst_24 = arith.constant 0.000000e+00 : f32
      %40 = vector.broadcast %cst_24 : f32 to vector<1x8x128xf32>
      %c0_25 = arith.constant 0 : index
      %c0_26 = arith.constant 0 : index
      %c0_27 = arith.constant 0 : index
      %41 = vector.load %arg5[%c0_25, %c0_26, %c0_27] : memref<1x8x128xf32, #tpu.memory_space<vmem>>, vector<1x8x128xf32>
      tpu.vector_store %arg5[%c0_25, %c0_26, %c0_27], %40 {strides = array<i32>} : memref<1x8x128xf32, #tpu.memory_space<vmem>>, vector<1x8x128xf32>,
    } else {
    }
    %cst = arith.constant 0.000000e+00 : f32
    %3 = vector.broadcast %cst : f32 to vector<8x128xf32>
    %c0_i32_1 = arith.constant 0 : i32
    %c16_i32 = arith.constant 16 : i32
    %4 = arith.muli %c0_i32_1, %c16_i32 : i32
    %5 = tpu.assume_multiple %4, 8 : i32
    %6 = arith.index_cast %5 : i32 to index
    %c0 = arith.constant 0 : index
    %7 = vector.load %arg2[%6, %c0] : memref<16x128xf32, #tpu.memory_space<vmem>>, vector<16x128xf32>
    %8 = arith.index_cast %5 : i32 to index
    %c0_2 = arith.constant 0 : index
    %9 = vector.load %arg3[%8, %c0_2] : memref<16x128xbf16, #tpu.memory_space<vmem>>, vector<16x128xbf16>
    %10 = arith.extf %9 : vector<16x128xbf16> to vector<16x128xf32>
    %cst_3 = arith.constant 5.000000e-01 : f32
    %11 = vector.broadcast %cst_3 : f32 to vector<16x128xf32>
    %12 = arith.mulf %11, %7 : vector<16x128xf32>
    %13 = math.tanh %12 : vector<16x128xf32>
    %cst_4 = arith.constant 1.000000e+00 : f32
    %14 = vector.broadcast %cst_4 : f32 to vector<16x128xf32>
    %15 = arith.addf %13, %14 : vector<16x128xf32>
    %cst_5 = arith.constant 5.000000e-01 : f32
    %16 = vector.broadcast %cst_5 : f32 to vector<16x128xf32>
    %17 = arith.mulf %16, %15 : vector<16x128xf32>
    %18 = arith.mulf %17, %10 : vector<16x128xf32>
    %19 = arith.addf %17, %10 : vector<16x128xf32>
    %20 = vector.shape_cast %18 : vector<16x128xf32> to vector<2x8x128xf32>
    %cst_6 = arith.constant dense<0.000000e+00> : vector<8x128xf32>
    %21 = vector.multi_reduction <add>, %20, %cst_6 [0] : vector<2x8x128xf32> to vector<8x128xf32>
    %22 = arith.addf %3, %21 : vector<8x128xf32>
    %23 = vector.shape_cast %19 : vector<16x128xf32> to vector<2x8x128xf32>
    %cst_7 = arith.constant dense<0.000000e+00> : vector<8x128xf32>
    %24 = vector.multi_reduction <add>, %23, %cst_7 [0] : vector<2x8x128xf32> to vector<8x128xf32>
    %25 = arith.addf %3, %24 : vector<8x128xf32>
    %c1_i32 = arith.constant 1 : i32
    %c0_8 = arith.constant 0 : index
    %c0_9 = arith.constant 0 : index
    %c0_10 = arith.constant 0 : index
    %26 = vector.load %arg4[%c0_8, %c0_9, %c0_10] : memref<1x8x128xf32, #tpu.memory_space<vmem>>, vector<1x8x128xf32>
    %27 = vector.shape_cast %26 : vector<1x8x128xf32> to vector<8x128xf32>
    %28 = arith.addf %27, %22 : vector<8x128xf32>
    %c0_11 = arith.constant 0 : index
    %c0_12 = arith.constant 0 : index
    %c0_13 = arith.constant 0 : index
    %29 = vector.load %arg4[%c0_11, %c0_12, %c0_13] : memref<1x8x128xf32, #tpu.memory_space<vmem>>, vector<1x8x128xf32>
    %30 = vector.shape_cast %29 : vector<1x8x128xf32> to vector<8x128xf32>
    %31 = vector.shape_cast %28 : vector<8x128xf32> to vector<1x8x128xf32>
    tpu.vector_store %arg4[%c0_11, %c0_12, %c0_13], %31 {strides = array<i32>} : memref<1x8x128xf32, #tpu.memory_space<vmem>>, vector<1x8x128xf32>,
    %c0_14 = arith.constant 0 : index
    %c0_15 = arith.constant 0 : index
    %c0_16 = arith.constant 0 : index
    %32 = vector.load %arg5[%c0_14, %c0_15, %c0_16] : memref<1x8x128xf32, #tpu.memory_space<vmem>>, vector<1x8x128xf32>
    %33 = vector.shape_cast %32 : vector<1x8x128xf32> to vector<8x128xf32>
    %34 = arith.addf %33, %25 : vector<8x128xf32>
    %c0_17 = arith.constant 0 : index
    %c0_18 = arith.constant 0 : index
    %c0_19 = arith.constant 0 : index
    %35 = vector.load %arg5[%c0_17, %c0_18, %c0_19] : memref<1x8x128xf32, #tpu.memory_space<vmem>>, vector<1x8x128xf32>
    %36 = vector.shape_cast %35 : vector<1x8x128xf32> to vector<8x128xf32>
    %37 = vector.shape_cast %34 : vector<8x128xf32> to vector<1x8x128xf32>
    tpu.vector_store %arg5[%c0_17, %c0_18, %c0_19], %37 {strides = array<i32>} : memref<1x8x128xf32, #tpu.memory_space<vmem>>, vector<1x8x128xf32>,
    return
  }
  func.func @transform_0(%arg0: i32, %arg1: i32) -> (i32, i32) {
    %c1_i32 = arith.constant 1 : i32
    %0 = arith.muli %arg0, %c1_i32 : i32
    %1 = arith.addi %0, %arg1 : i32
    %c0_i32 = arith.constant 0 : i32
    %2 = arith.minsi %1, %c0_i32 : i32
    %c0_i32_0 = arith.constant 0 : i32
    %c0_i32_1 = arith.constant 0 : i32
    return %2, %c0_i32_0 : i32, i32
  }
  func.func @transform_1(%arg0: i32, %arg1: i32) -> (i32, i32) {
    %c1_i32 = arith.constant 1 : i32
    %0 = arith.muli %arg0, %c1_i32 : i32
    %1 = arith.addi %0, %arg1 : i32
    %c0_i32 = arith.constant 0 : i32
    %2 = arith.minsi %1, %c0_i32 : i32
    %c0_i32_0 = arith.constant 0 : i32
    %c0_i32_1 = arith.constant 0 : i32
    return %2, %c0_i32_0 : i32, i32
  }
  func.func @transform_2(%arg0: i32, %arg1: i32) -> (i32, i32, i32) {
    %c0_i32 = arith.constant 0 : i32
    %c0_i32_0 = arith.constant 0 : i32
    %c0_i32_1 = arith.constant 0 : i32
    return %arg0, %c0_i32, %c0_i32_0 : i32, i32, i32
  }
  func.func @transform_3(%arg0: i32, %arg1: i32) -> (i32, i32, i32) {
    %c0_i32 = arith.constant 0 : i32
    %c0_i32_0 = arith.constant 0 : i32
    %c0_i32_1 = arith.constant 0 : i32
    return %arg0, %c0_i32, %c0_i32_0 : i32, i32, i32
  }
}

</mosaic_0001>

<bundles_post_ra>
// kernel: tpu_custom_call.1
= control target key start
LH: loop header
LB: loop body
LE: loop exit
PB: predicated region body
PF: predicated region fallthrough
CT: control target
= control target key end

     0   :  { %9 = vsyncpa [#allocation3], 0  ;;  %s320_s0 = inlined_call_operand.hbm [shape: f32[16,128], index: 0, kind: input, shape index: {}]   ;;  %s321_s1 = inlined_call_operand.hbm [shape: bf16[16,128], index: 1, kind: input, shape index: {}]   ;;  %s322_s2 = inlined_call_operand.hbm [shape: f32[1,8,128], index: 2, kind: output, shape index: {0}]   ;;  %s323_s3 = inlined_call_operand.hbm [shape: f32[1,8,128], index: 3, kind: output, shape index: {1}]  }
   0x1   :  { %10 = vsyncpa [#allocation6], 0 }
   0x2   :  { %11 = vsyncpa [#allocation4], 0 }
   0x3   :  { %12 = vsyncpa [#allocation9], 0  ;;  %s244_s12 = smov [#allocation2]   ;;  %s148_s16 = scalar_lea.hbm %s320_s0, 256 }
   0x4   :  { %s24_s13 = sshll.u32 %s244_s12, 4  ;;  %p149_p0 = scmp.ne.s32.totalorder %s320_s0, %s148_s16  ;;  %s25_s13 = int_to_ptr.vmem [resolvable:$true] %s24_s13 }
   0x5   :  { %p152_p1 = scmp.lt.u32.totalorder %s148_s16, %s320_s0 }
   0x7   :  { %p154_p2 = pnand %p152_p1, %p149_p0 }
   0x9   :  { %157 = shalt.err (!%p154_p2)
}
   0xa   :  { %s158_s21 = scalar_lea.vmem %s25_s13, 256  ;;  %p163_p4 = scmp.lt.s32.totalorder %s25_s13, %s25_s13 }
   0xb   :  { %p159_p3 = scmp.ne.s32.totalorder %s25_s13, %s158_s21  ;;  %p164_p5 = scmp.lt.s32.totalorder %s158_s21, %s158_s21 }
   0xd   :  { %p165_p6 = por %p164_p5, %p163_p4 }
   0xf   :  { %p166_p7 = pnand %p165_p6, %p159_p3 }
  0x11   :  { %169 = shalt.err (!%p166_p7)
}
  0x12   :  { %s245_s22 = smov 128   ;;  %s246_s23 = smov 8  }
  0x13   :  { %30 = dma.hbm_to_vmem [thread:$0]  %s320_s0, 256, %s25_s13, [#allocation3], %s245_s22, %s245_s22, %s246_s23  }
  0x14   :  { %s247_s26 = smov [#allocation5]   ;;  %s170_s30 = scalar_lea.hbm %s321_s1, 128 }
  0x15   :  { %s42_s27 = sshll.u32 %s247_s26, 4  ;;  %p171_p8 = scmp.ne.s32.totalorder %s321_s1, %s170_s30  ;;  %s43_s27 = int_to_ptr.vmem [resolvable:$true] %s42_s27 }
  0x16   :  { %p174_p9 = scmp.lt.u32.totalorder %s170_s30, %s321_s1 }
  0x18   :  { %p176_p10 = pnand %p174_p9, %p171_p8 }
  0x1a   :  { %179 = shalt.err (!%p176_p10)
}
  0x1b   :  { %s180_s8 = scalar_lea.vmem %s43_s27, 128  ;;  %p185_p12 = scmp.lt.s32.totalorder %s43_s27, %s43_s27 }
  0x1c   :  { %p181_p11 = scmp.ne.s32.totalorder %s43_s27, %s180_s8  ;;  %p186_p13 = scmp.lt.s32.totalorder %s180_s8, %s180_s8 }
  0x1e   :  { %p187_p0 = por %p186_p13, %p185_p12 }
  0x20   :  { %p188_p1 = pnand %p187_p0, %p181_p11 }
  0x22   :  { %191 = shalt.err (!%p188_p1)
}
  0x23   :  { %s248_s0 = smov 64   ;;  %s249_s9 = smov 4  }
  0x24   :  { %48 = dma.hbm_to_vmem [thread:$0]  %s321_s1, 128, %s43_s27, [#allocation6], %s248_s0, %s248_s0, %s249_s9  }
  0x25   :  { %236 = dma.done.wait [#allocation3], 256  }
  0x26   :  { %237 = vsyncadd [#allocation3], 4294967040 }
  0x27   :  { %238 = dma.done.wait [#allocation6], 128  }
  0x28   :  { %239 = vsyncadd [#allocation6], 4294967168  ;;  %v69_v0 = vld [vmem:[#allocation2] sm:$0xff]  ;;  %v70_v1 = vld [vmem:[#allocation2 + $0x8] sm:$0xff]  ;;  %s250_s1 = smov [#allocation7]   ;;  %s251_s13 = smov [#allocation8]  }
  0x29   :  { %v75_v2 = vmul.f32 0.5, %v69_v0  ;;  %v76_v3 = vmul.f32 0.5, %v70_v1  ;;  %v132_v4 = vld [vmem:[#allocation5] sm:$0xff]   ;;  %s103_s12 = sshll.u32 %s250_s1, 4  ;;  %s113_s14 = sshll.u32 %s251_s13, 4  ;;  %s104_s12 = int_to_ptr.vmem [resolvable:$true] %s103_s12  ;;  %s114_s14 = int_to_ptr.vmem [resolvable:$true] %s113_s14 }
  0x2a   :  { %v133_v7 = vunpack.c.l.bf16 %v132_v4  ;;  %v134_v9 = vunpack.c.h.bf16 %v132_v4  ;;  %s192_s15 = scalar_lea.vmem %s104_s12, 128  ;;  %p197_p3 = scmp.lt.s32.totalorder %s104_s12, %s104_s12 }
  0x2b   :  { %144 = vtanh.f32 %v75_v2  ;;  %p193_p2 = scmp.ne.s32.totalorder %s104_s12, %s192_s15  ;;  %p198_p4 = scmp.lt.s32.totalorder %s192_s15, %s192_s15 }
  0x2c   :  { %146 = vtanh.f32 %v76_v3 }
  0x2d   :  { %p199_p5 = por %p198_p4, %p197_p3 }
  0x2f   :  { %p200_p6 = pnand %p199_p5, %p193_p2 }
  0x35   :  { %v145_v5 = vpop.eup %144 }
  0x36   :  { %v147_v6 = vpop.eup %146  ;;  %v79_v8 = vadd.f32 1.0, %v145_v5 }
  0x37   :  { %v80_v10 = vadd.f32 1.0, %v147_v6 }
  0x38   :  { %v81_v11 = vmul.f32 0.5, %v79_v8 }
  0x39   :  { %v82_v12 = vmul.f32 0.5, %v80_v10 }
  0x3a   :  { %v83_v13 = vmul.f32 %v133_v7, %v81_v11  ;;  %v85_v14 = vadd.f32 %v133_v7, %v81_v11 }
  0x3b   :  { %v84_v15 = vmul.f32 %v134_v9, %v82_v12  ;;  %v86_v16 = vadd.f32 %v134_v9, %v82_v12 }
  0x3d   :  { %v87_v17 = vadd.f32 %v84_v15, %v83_v13  ;;  %v89_v18 = vadd.f32 %v86_v16, %v85_v14 }
  0x3f   :  { %93 = vst [vmem:[#allocation7] sm:$0xff] %v87_v17  ;;  %96 = vst [vmem:[#allocation8] sm:$0xff] %v89_v18 }
  0x40   :  { %203 = shalt.err (!%p200_p6)
}
  0x41   :  { %s204_s18 = scalar_lea.hbm %s322_s2, 128 }
  0x42   :  { %p205_p7 = scmp.ne.s32.totalorder %s322_s2, %s204_s18  ;;  %p208_p8 = scmp.lt.u32.totalorder %s204_s18, %s322_s2 }
  0x44   :  { %p210_p9 = pnand %p208_p8, %p205_p7 }
  0x46   :  { %213 = shalt.err (!%p210_p9)
}
  0x47   :  { %106 = dma.vmem_to_hbm [thread:$0]  %s104_s12, 128, %s322_s2, [#allocation4]  }
  0x48   :  { %s214_s25 = scalar_lea.vmem %s114_s14, 128  ;;  %p219_p11 = scmp.lt.s32.totalorder %s114_s14, %s114_s14 }
  0x49   :  { %p215_p10 = scmp.ne.s32.totalorder %s114_s14, %s214_s25  ;;  %p220_p12 = scmp.lt.s32.totalorder %s214_s25, %s214_s25 }
  0x4b   :  { %p221_p13 = por %p220_p12, %p219_p11 }
  0x4d   :  { %p222_p0 = pnand %p221_p13, %p215_p10 }
  0x4f   :  { %225 = shalt.err (!%p222_p0)
}
  0x50   :  { %s226_s28 = scalar_lea.hbm %s323_s3, 128 }
  0x51   :  { %p227_p1 = scmp.ne.s32.totalorder %s323_s3, %s226_s28  ;;  %p230_p2 = scmp.lt.u32.totalorder %s226_s28, %s323_s3 }
  0x53   :  { %p232_p3 = pnand %p230_p2, %p227_p1 }
  0x55   :  { %235 = shalt.err (!%p232_p3)
}
  0x56   :  { %116 = dma.vmem_to_hbm [thread:$0]  %s114_s14, 128, %s323_s3, [#allocation9]  }
  0x57   :  { %240 = dma.done.wait [#allocation4], 128  }
  0x58   :  { %241 = vsyncadd [#allocation4], 4294967168 }
  0x59   :  { %242 = dma.done.wait [#allocation9], 128  }
  0x5a   :  { %243 = vsyncadd [#allocation9], 4294967168 }
  0x5b   :  { %123 = vsyncpa [#allocation3], 1 }
  0x5c   :  { %124 = vsyncpa [#allocation6], 1 }
  0x5d   :  { %125 = vsyncpa [#allocation4], 1 }
  0x5e   :  { %126 = vsyncpa [#allocation9], 1 }

</bundles_post_ra>
